<compile_context>
chip_gen: v6e
topology: v6e:2x2x1
jax: 0.10.0
libtpu: 0.0.40
codegen_flags: <defaults>
</compile_context>

<pallas_src>
import functools

import jax
import jax.numpy as jnp
from jax import lax
from jax.experimental import pallas as pl
from jax.experimental.pallas import tpu as pltpu

LANE = 128
SUBLANE = 8


def _round_up(n, m):
    return ((n + m - 1) // m) * m


def _pad_to(x, shape):
    pads = [(0, s - d) for s, d in zip(shape, x.shape)]
    return jnp.pad(x, pads)


def prepare_params(w_i2h, b_i2h, w_i2o, b_i2o, input_size, param_dtype=jnp.float32):
    """One-time parameter preparation (hoisted out of the hot path).

    PyTorch nn.Linear layouts: w_i2h [H, I+H], w_i2o [O, I+H], b_* [H]/[O].

    Returns a dict with:
      wx    [I, P]  input-slice of the packed, transposed weights
      wh    [H, P]  hidden-slice of the packed, transposed weights
      b     [1, P]  packed bias
      masks [2, P]  row 0: additive mask (0 on logit lanes, -1e30 elsewhere)
                    row 1: is_logit indicator (1.0 on logit lanes, 0.0 else)
    Columns [0, H) of P hold hidden' ; [H, H+O) hold the logits; the rest pad.
    """
    H, K = w_i2h.shape
    I = input_size
    assert K == I + H, "w_i2h must have shape [H, I+H]"
    O = w_i2o.shape[0]
    P = _round_up(H + O, LANE)

    w_packed = jnp.zeros((K, P), dtype=jnp.float32)
    w_packed = w_packed.at[:, :H].set(jnp.transpose(w_i2h).astype(jnp.float32))
    w_packed = w_packed.at[:, H:H + O].set(jnp.transpose(w_i2o).astype(jnp.float32))

    b = jnp.zeros((1, P), dtype=jnp.float32)
    b = b.at[0, :H].set(b_i2h.astype(jnp.float32))
    b = b.at[0, H:H + O].set(b_i2o.astype(jnp.float32))

    col = jnp.arange(P)
    is_logit = ((col >= H) & (col < H + O)).astype(jnp.float32)
    neg_mask = (1.0 - is_logit) * jnp.float32(-1e30)
    masks = jnp.stack([neg_mask, is_logit], axis=0)              # [2, P]

    return {
        "wx": w_packed[:I].astype(param_dtype),                  # [I, P]
        "wh": w_packed[I:].astype(param_dtype),                  # [H, P]
        "b": b,                                                  # [1, P]
        "masks": masks,                                          # [2, P]
        "I": I, "H": H, "O": O, "P": P,
    }


def _step_math(z, neg_mask, is_logit):
    """Given z = combined @ W + b ([B, P]), return the output slab.

    Logit lanes -> log_softmax(z); hidden / padding lanes -> z unchanged.
    """
    masked = z + neg_mask                                        # kill non-logit lanes
    m = jnp.max(masked, axis=1, keepdims=True)
    lse = jnp.log(jnp.sum(jnp.exp(masked - m), axis=1, keepdims=True))
    return z - is_logit * (m + lse)


# ----------------------------- single-step cell -----------------------------

def rnn_cell_kernel(x_ref, h_ref, wx_ref, wh_ref, b_ref, mask_ref, slab_ref):
    # combined @ W == x @ Wx + h @ Wh  (no concat needed anywhere).
    z = (jnp.dot(x_ref[...], wx_ref[...], preferred_element_type=jnp.float32)
         + jnp.dot(h_ref[...], wh_ref[...], preferred_element_type=jnp.float32)
         + b_ref[...])
    neg_mask = mask_ref[0:1, :]
    is_logit = mask_ref[1:2, :]
    slab_ref[...] = _step_math(z, neg_mask, is_logit).astype(slab_ref.dtype)


def rnn_forward(x, h, params):
    """Single-step forward matching RNN.forward(input, hidden).

    x: [B, I], h: [B, H]. Returns (log_softmax output [B, O], new hidden [B, H]).
    """
    I, H, O, P = params["I"], params["H"], params["O"], params["P"]
    B = x.shape[0]
    B_pad = _round_up(max(B, SUBLANE), SUBLANE)                  # >=8 sublanes

    xp = _pad_to(x.astype(jnp.float32), (B_pad, I))
    hp = _pad_to(h.astype(jnp.float32), (B_pad, H))

    slab = pl.pallas_call(
        rnn_cell_kernel,
        out_shape=jax.ShapeDtypeStruct((B_pad, P), jnp.float32),
        grid_spec=pltpu.PrefetchScalarGridSpec(
            num_scalar_prefetch=0,
            grid=(),
            in_specs=[
                pl.BlockSpec((B_pad, I), lambda: (0, 0)),
                pl.BlockSpec((B_pad, H), lambda: (0, 0)),
                pl.BlockSpec((I, P), lambda: (0, 0)),
                pl.BlockSpec((H, P), lambda: (0, 0)),
                pl.BlockSpec((1, P), lambda: (0, 0)),
                pl.BlockSpec((2, P), lambda: (0, 0)),
            ],
            out_specs=pl.BlockSpec((B_pad, P), lambda: (0, 0)),
        ),
    )(xp, hp, params["wx"], params["wh"], params["b"], params["masks"])

    out = slab[:B, H:H + O].astype(x.dtype)
    hidden_new = slab[:B, :H].astype(x.dtype)
    return out, hidden_new


# --------------------------- chunked time-loop version -----------------------

def rnn_seq_kernel(x_ref, h0_ref, wx_ref, wh_ref, b_ref, mask_ref,
                   slab_ref, hcarry_ref, *, hidden_size, t_chunk, t_total):
    c = pl.program_id(0)

    @pl.when(c == 0)
    def _():
        hcarry_ref[...] = h0_ref[...]

    # Hoisted loads: read once per chunk, reused by every unrolled step.
    wx = wx_ref[...]
    wh = wh_ref[...]
    b = b_ref[...]
    neg_mask = mask_ref[0:1, :]
    is_logit = mask_ref[1:2, :]

    def step(i, h):
        z = (jnp.dot(x_ref[i], wx, preferred_element_type=jnp.float32)
             + jnp.dot(h, wh, preferred_element_type=jnp.float32)
             + b)
        slab_ref[i] = _step_math(z, neg_mask, is_logit).astype(slab_ref.dtype)
        h_new = z[:, :hidden_size]
        # Guard against padded trailing timesteps (T not a multiple of Tc).
        valid = (c * t_chunk + i) < t_total
        return jnp.where(valid, h_new, h)

    hcarry_ref[...] = lax.fori_loop(0, t_chunk, step, hcarry_ref[...],
                                    unroll=True)


def rnn_sequence_forward(xs, h0, params, *, t_chunk=8):
    """Runs the RNN cell over a whole sequence in ONE pallas_call.

    xs: [T, B, I], h0: [B, H].
    Returns (per-step log_softmax outputs [T, B, O], final hidden [B, H]).
    Per-step semantics are identical to RNN.forward.
    """
    I, H, O, P = params["I"], params["H"], params["O"], params["P"]
    T, B, _ = xs.shape

    Tc = min(t_chunk, T)
    T_pad = _round_up(T, Tc)
    B_pad = _round_up(max(B, SUBLANE), SUBLANE)

    xs_p = _pad_to(xs.astype(jnp.float32), (T_pad, B_pad, I))
    h0_p = _pad_to(h0.astype(jnp.float32), (B_pad, H))

    slab, h_final = pl.pallas_call(
        functools.partial(rnn_seq_kernel, hidden_size=H,
                          t_chunk=Tc, t_total=T),
        out_shape=(
            jax.ShapeDtypeStruct((T_pad, B_pad, P), jnp.float32),
            jax.ShapeDtypeStruct((B_pad, H), jnp.float32),
        ),
        grid_spec=pltpu.PrefetchScalarGridSpec(
            num_scalar_prefetch=0,
            grid=(T_pad // Tc,),
            in_specs=[
                pl.BlockSpec((Tc, B_pad, I), lambda c: (c, 0, 0)),  # x chunk
                pl.BlockSpec((B_pad, H), lambda c: (0, 0)),         # h0 (t=0)
                pl.BlockSpec((I, P), lambda c: (0, 0)),             # resident
                pl.BlockSpec((H, P), lambda c: (0, 0)),             # resident
                pl.BlockSpec((1, P), lambda c: (0, 0)),             # resident
                pl.BlockSpec((2, P), lambda c: (0, 0)),             # masks
            ],
            out_specs=[
                pl.BlockSpec((Tc, B_pad, P), lambda c: (c, 0, 0)),  # out chunk
                pl.BlockSpec((B_pad, H), lambda c: (0, 0)),         # carried h
            ],
        ),
        compiler_params=pltpu.CompilerParams(
            dimension_semantics=("arbitrary",)),                    # time is sequential
    )(xs_p, h0_p, params["wx"], params["wh"], params["b"], params["masks"])

    # TODO(synk): at large T*B, consume the lane-dense slab directly (or cast
    # to bf16 in-kernel) instead of this wrapper-side slice pass.
    out = slab[:T, :B, H:H + O].astype(xs.dtype)
    return out, h_final[:B].astype(xs.dtype)


# --------------------------------- reference ---------------------------------

def _reference_step(x, h, w_i2h, b_i2h, w_i2o, b_i2o):
    combined = jnp.concatenate([x, h], axis=1)
    hidden = combined @ w_i2h.T + b_i2h
    logits = combined @ w_i2o.T + b_i2o
    return jax.nn.log_softmax(logits, axis=1), hidden


def _reference_sequence(xs, h0, w_i2h, b_i2h, w_i2o, b_i2o):
    outs, h = [], h0
    for t in range(xs.shape[0]):
        o, h = _reference_step(xs[t], h, w_i2h, b_i2h, w_i2o, b_i2o)
        outs.append(o)
    return jnp.stack(outs, axis=0), h


if __name__ == "__main__":
    batch, input_size, hidden_size, output_size, seq_len = 2, 16, 32, 8, 8

    key = jax.random.PRNGKey(0)
    k_x, k_h, k_w1, k_b1, k_w2, k_b2, k_seq = jax.random.split(key, 7)

    x = jax.random.normal(k_x, (batch, input_size), dtype=jnp.float32)
    h = jax.random.normal(k_h, (batch, hidden_size), dtype=jnp.float32)
    xs = jax.random.normal(k_seq, (seq_len, batch, input_size), dtype=jnp.float32)

    # PyTorch nn.Linear shapes: [out, in] / [out].
    fan_in = input_size + hidden_size
    bound = 1.0 / (fan_in ** 0.5)
    w_i2h = jax.random.uniform(k_w1, (hidden_size, fan_in),
                               minval=-bound, maxval=bound, dtype=jnp.float32)
    b_i2h = jax.random.uniform(k_b1, (hidden_size,),
                               minval=-bound, maxval=bound, dtype=jnp.float32)
    w_i2o = jax.random.uniform(k_w2, (output_size, fan_in),
                               minval=-bound, maxval=bound, dtype=jnp.float32)
    b_i2o = jax.random.uniform(k_b2, (output_size,),
                               minval=-bound, maxval=bound, dtype=jnp.float32)

    # Parameter packing / mask precompute happens exactly once.
    params = prepare_params(w_i2h, b_i2h, w_i2o, b_i2o, input_size)

    # --- single step (matches RNN.forward exactly) ---
    out, hnew = rnn_forward(x, h, params)
    jax.block_until_ready((out, hnew))
    ref_out, ref_h = _reference_step(x, h, w_i2h, b_i2h, w_i2o, b_i2o)
    assert out.shape == (batch, output_size) and hnew.shape == (batch, hidden_size)
    assert jnp.allclose(out, ref_out, atol=1e-5, rtol=1e-5), "cell output mismatch"
    assert jnp.allclose(hnew, ref_h, atol=1e-5, rtol=1e-5), "cell hidden mismatch"

    # --- chunked sequence: same per-step semantics, one pallas_call for all T ---
    seq_out, seq_h = rnn_sequence_forward(xs, h, params, t_chunk=8)
    jax.block_until_ready((seq_out, seq_h))
    ref_seq_out, ref_seq_h = _reference_sequence(xs, h, w_i2h, b_i2h, w_i2o, b_i2o)
    assert seq_out.shape == (seq_len, batch, output_size)
    assert seq_h.shape == (batch, hidden_size)
    assert jnp.allclose(seq_out, ref_seq_out, atol=1e-3, rtol=1e-3), "seq output mismatch"
    assert jnp.allclose(seq_h, ref_seq_h, atol=1e-3, rtol=1e-3), "seq hidden mismatch"

    print("KERNEL_OK")
</pallas_src>

<mosaic_0001>
module attributes {stable_mosaic.version = 11 : i64} {
  func.func @rnn_cell_kernel(%arg0: memref<8x16xf32, #tpu.memory_space<vmem>>, %arg1: memref<8x32xf32, #tpu.memory_space<vmem>>, %arg2: memref<16x128xf32, #tpu.memory_space<vmem>>, %arg3: memref<32x128xf32, #tpu.memory_space<vmem>>, %arg4: memref<1x128xf32, #tpu.memory_space<vmem>>, %arg5: memref<2x128xf32, #tpu.memory_space<vmem>>, %arg6: memref<8x128xf32, #tpu.memory_space<vmem>>) attributes {dimension_semantics = [], scalar_prefetch = 0 : i64, scratch_operands = 0 : i64, tpu.core_type = #tpu.core_type<tc>} {
    %c0 = arith.constant 0 : index
    %c0_0 = arith.constant 0 : index
    %0 = vector.load %arg0[%c0, %c0_0] : memref<8x16xf32, #tpu.memory_space<vmem>>, vector<8x16xf32>
    %c0_1 = arith.constant 0 : index
    %c0_2 = arith.constant 0 : index
    %1 = vector.load %arg2[%c0_1, %c0_2] : memref<16x128xf32, #tpu.memory_space<vmem>>, vector<16x128xf32>
    %cst = arith.constant dense<0.000000e+00> : vector<8x128xf32>
    %2 = tpu.matmul %0, %1, %cst {dimension_numbers = #tpu.dot_dimension_numbers<[1], [0], [0], [1], [0, 0, 1, 1], [], []>} : vector<8x16xf32>, vector<16x128xf32>, vector<8x128xf32> -> vector<8x128xf32>
    %c0_3 = arith.constant 0 : index
    %c0_4 = arith.constant 0 : index
    %3 = vector.load %arg1[%c0_3, %c0_4] : memref<8x32xf32, #tpu.memory_space<vmem>>, vector<8x32xf32>
    %c0_5 = arith.constant 0 : index
    %c0_6 = arith.constant 0 : index
    %4 = vector.load %arg3[%c0_5, %c0_6] : memref<32x128xf32, #tpu.memory_space<vmem>>, vector<32x128xf32>
    %cst_7 = arith.constant dense<0.000000e+00> : vector<8x128xf32>
    %5 = tpu.matmul %3, %4, %cst_7 {dimension_numbers = #tpu.dot_dimension_numbers<[1], [0], [0], [1], [0, 0, 1, 1], [], []>} : vector<8x32xf32>, vector<32x128xf32>, vector<8x128xf32> -> vector<8x128xf32>
    %6 = arith.addf %2, %5 : vector<8x128xf32>
    %c0_8 = arith.constant 0 : index
    %c0_9 = arith.constant 0 : index
    %7 = vector.load %arg4[%c0_8, %c0_9] : memref<1x128xf32, #tpu.memory_space<vmem>>, vector<1x128xf32>
    %8 = vector.broadcast %7 : vector<1x128xf32> to vector<8x128xf32>
    %9 = arith.addf %6, %8 : vector<8x128xf32>
    %c0_10 = arith.constant 0 : index
    %c0_11 = arith.constant 0 : index
    %10 = vector.load %arg5[%c0_10, %c0_11] : memref<2x128xf32, #tpu.memory_space<vmem>>, vector<1x128xf32>
    %c1 = arith.constant 1 : index
    %c0_12 = arith.constant 0 : index
    %11 = vector.load %arg5[%c1, %c0_12] : memref<2x128xf32, #tpu.memory_space<vmem>>, vector<1x128xf32>
    %12 = vector.broadcast %10 : vector<1x128xf32> to vector<8x128xf32>
    %13 = arith.addf %9, %12 : vector<8x128xf32>
    %cst_13 = arith.constant dense<0xFF800000> : vector<8xf32>
    %14 = vector.multi_reduction <maximumf>, %13, %cst_13 [1] : vector<8x128xf32> to vector<8xf32>
    %15 = vector.shape_cast %14 : vector<8xf32> to vector<8x1xf32>
    %16 = vector.broadcast %15 : vector<8x1xf32> to vector<8x128xf32>
    %17 = arith.subf %13, %16 : vector<8x128xf32>
    %18 = math.exp %17 : vector<8x128xf32>
    %cst_14 = arith.constant dense<0.000000e+00> : vector<8xf32>
    %19 = vector.multi_reduction <add>, %18, %cst_14 [1] : vector<8x128xf32> to vector<8xf32>
    %20 = vector.shape_cast %19 : vector<8xf32> to vector<8x1xf32>
    %21 = math.log %20 : vector<8x1xf32>
    %22 = arith.addf %15, %21 : vector<8x1xf32>
    %23 = vector.broadcast %11 : vector<1x128xf32> to vector<8x128xf32>
    %24 = vector.broadcast %22 : vector<8x1xf32> to vector<8x128xf32>
    %25 = arith.mulf %23, %24 : vector<8x128xf32>
    %26 = arith.subf %9, %25 : vector<8x128xf32>
    %c0_15 = arith.constant 0 : index
    %c0_16 = arith.constant 0 : index
    %27 = vector.load %arg6[%c0_15, %c0_16] : memref<8x128xf32, #tpu.memory_space<vmem>>, vector<8x128xf32>
    tpu.vector_store %arg6[%c0_15, %c0_16], %26 {strides = array<i32>} : memref<8x128xf32, #tpu.memory_space<vmem>>, vector<8x128xf32>,
    return
  }
}

</mosaic_0001>

<bundles_post_ra>
// kernel: tpu_custom_call.1
= control target key start
LH: loop header
LB: loop body
LE: loop exit
PB: predicated region body
PF: predicated region fallthrough
CT: control target
= control target key end

     0   :  { %11 = vsyncpa [#allocation3], 0  ;;  %s500_s0 = inlined_call_operand.hbm [shape: f32[8,16], index: 0, kind: input, shape index: {}]   ;;  %s501_s1 = inlined_call_operand.hbm [shape: f32[8,32], index: 1, kind: input, shape index: {}]   ;;  %s502_s2 = inlined_call_operand.hbm [shape: f32[16,128], index: 2, kind: input, shape index: {}]   ;;  %s503_s3 = inlined_call_operand.hbm [shape: f32[32,128], index: 3, kind: input, shape index: {}]   ;;  %s504_s4 = inlined_call_operand.vmem [shape: f32[1,128], index: 4, kind: input, shape index: {}]   ;;  %s505_s5 = inlined_call_operand.vmem [shape: f32[2,128], index: 5, kind: input, shape index: {}]   ;;  %s506_s6 = inlined_call_operand.hbm [shape: f32[8,128], index: 6, kind: output, shape index: {}]  }
   0x1   :  { %12 = vsyncpa [#allocation6], 0 }
   0x2   :  { %13 = vsyncpa [#allocation9], 0 }
   0x3   :  { %14 = vsyncpa [#allocation4], 0  ;;  %s432_s21 = smov [#allocation5]   ;;  %s433_s23 = smov [#allocation2]  }
   0x4   :  { %s31_s22 = sshll.u32 %s432_s21, 4  ;;  %s21_s24 = sshll.u32 %s433_s23, 4  ;;  %s32_s22 = int_to_ptr.vmem [resolvable:$true] %s31_s22  ;;  %s22_s24 = int_to_ptr.vmem [resolvable:$true] %s21_s24 }
   0x5   :  { %s332_s25 = scalar_lea.vmem %s32_s22, 128  ;;  %p337_p1 = scmp.lt.s32.totalorder %s32_s22, %s32_s22 }
   0x6   :  { %p333_p0 = scmp.ne.s32.totalorder %s32_s22, %s332_s25  ;;  %p338_p2 = scmp.lt.s32.totalorder %s332_s25, %s332_s25 }
   0x8   :  { %p339_p3 = por %p338_p2, %p337_p1 }
   0xa   :  { %p340_p4 = pnand %p339_p3, %p333_p0 }
   0xc   :  { %343 = shalt.err (!%p340_p4)
}
   0xd   :  { %34 = dma.hbm_to_vmem [thread:$0]  %s501_s1, 128, %s32_s22, [#allocation6]  }
   0xe   :  { %s352_s28 = scalar_lea.vmem %s22_s24, 128  ;;  %p357_p6 = scmp.lt.s32.totalorder %s22_s24, %s22_s24 }
   0xf   :  { %p353_p5 = scmp.ne.s32.totalorder %s22_s24, %s352_s28  ;;  %p358_p7 = scmp.lt.s32.totalorder %s352_s28, %s352_s28 }
  0x11   :  { %p359_p8 = por %p358_p7, %p357_p6 }
  0x13   :  { %p360_p9 = pnand %p359_p8, %p353_p5 }
  0x15   :  { %363 = shalt.err (!%p360_p9)
}
  0x16   :  { %24 = dma.hbm_to_vmem [thread:$0]  %s500_s0, 128, %s22_s24, [#allocation3]  }
  0x17   :  { %s434_s7 = smov [#allocation7]  }
  0x18   :  { %s40_s8 = sshll.u32 %s434_s7, 4  ;;  %s41_s8 = int_to_ptr.vmem [resolvable:$true] %s40_s8 }
  0x19   :  { %s372_s9 = scalar_lea.vmem %s41_s8, 256  ;;  %p377_p11 = scmp.lt.s32.totalorder %s41_s8, %s41_s8 }
  0x1a   :  { %p373_p10 = scmp.ne.s32.totalorder %s41_s8, %s372_s9  ;;  %p378_p12 = scmp.lt.s32.totalorder %s372_s9, %s372_s9 }
  0x1c   :  { %p379_p13 = por %p378_p12, %p377_p11 }
  0x1e   :  { %p380_p0 = pnand %p379_p13, %p373_p10 }
  0x20   :  { %383 = shalt.err (!%p380_p0)
}
  0x21   :  { %s435_s1 = smov 128   ;;  %s436_s10 = smov 8  }
  0x22   :  { %46 = dma.hbm_to_vmem [thread:$0]  %s502_s2, 256, %s41_s8, [#allocation6], %s435_s1, %s435_s1, %s436_s10  }
  0x23   :  { %s437_s13 = smov [#allocation8]  }
  0x24   :  { %s52_s14 = sshll.u32 %s437_s13, 4  ;;  %s53_s14 = int_to_ptr.vmem [resolvable:$true] %s52_s14 }
  0x25   :  { %s392_s0 = scalar_lea.vmem %s53_s14, 512  ;;  %p397_p2 = scmp.lt.s32.totalorder %s53_s14, %s53_s14 }
  0x26   :  { %p393_p1 = scmp.ne.s32.totalorder %s53_s14, %s392_s0  ;;  %p398_p3 = scmp.lt.s32.totalorder %s392_s0, %s392_s0 }
  0x28   :  { %p399_p4 = por %p398_p3, %p397_p2 }
  0x2a   :  { %p400_p5 = pnand %p399_p4, %p393_p1 }
  0x2c   :  { %403 = shalt.err (!%p400_p5)
}
  0x2d   :  { %58 = dma.hbm_to_vmem [thread:$0]  %s503_s3, 512, %s53_s14, [#allocation9], %s435_s1, %s435_s1, %s436_s10  }
  0x2e   :  { %424 = dma.done.wait [#allocation3], 128  }
  0x2f   :  { %425 = vsyncadd [#allocation3], 4294967168 }
  0x30   :  { %426 = dma.done.wait [#allocation6], 384  }
  0x31   :  { %427 = vsyncadd [#allocation6], 4294966912 }
  0x32   :  { %428 = dma.done.wait [#allocation9], 512  }
  0x33   :  { %429 = vsyncadd [#allocation9], 4294966784  ;;  %v438_v0 = vmov 0.0   ;;  %vm439_vm0 = vmmov 0   ;;  %v82_v1 = vld [vmem:[#allocation8 + $0x18] sm:$0xff]  ;;  %v81_v2 = vld [vmem:[#allocation8 + $0x10] sm:$0xff] }
  0x34   :  { %293 = vmatprep.subr.mxu0 %v438_v0  ;;  %304 = vmatprep.subr.mxu1 %v438_v0  ;;  %v77_v3 = vld [vmem:[#allocation7 + $0x8] sm:$0xff]  ;;  %v76_v4 = vld [vmem:[#allocation7] sm:$0xff]  ;;  %v75_v5 = vld [vmem:[#allocation2] sm:$0xff]  ;;  %vm157_vm1 = vcmask 130048   ;;  %vm83_vm2 = vcmask 261120   ;;  %s440_s20 = smov [#allocation10]  }
  0x35   :  { %308 = vmatprep.mubr.msk.f32.mxu1 %vm439_vm0, %v438_v0  ;;  %301 = vmatprep.mubr.msk.f32.mxu0 %vm439_vm0, %v438_v0  ;;  %v80_v6 = vld [vmem:[#allocation8 + $0x8] sm:$0xff]  ;;  %v79_v7 = vld [vmem:[#allocation8] sm:$0xff]  ;;  %s269_s21 = sshll.u32 %s440_s20, 4  ;;  %s270_s21 = int_to_ptr.vmem [resolvable:$true] %s269_s21 }
  0x36   :  { %294 = vmatpush3.msra.mxu0 %v82_v1  ;;  %305 = vmatpush3.msra.mxu1 %v77_v3  ;;  %v78_v8 = vld [vmem:[#allocation5] sm:$0xff]  ;;  %v282_v12 = vld [vmem:[%s504_s4] ss:$0 sm:$0xff]  ;;  %v284_v25 = vld [vmem:[%s505_s5 + $0x1] ss:$0 sm:$0xff]  ;;  %s404_s22 = scalar_lea.vmem %s270_s21, 128  ;;  %p409_p7 = scmp.lt.s32.totalorder %s270_s21, %s270_s21 }
  0x37   :  { %295 = vmatprep.subr.mxu0 %v438_v0  ;;  %306 = vmatprep.subr.mxu1 %v438_v0  ;;  %v283_v15 = vld [vmem:[%s505_s5] ss:$0 sm:$0xff]  ;;  %p405_p6 = scmp.ne.s32.totalorder %s270_s21, %s404_s22  ;;  %p410_p8 = scmp.lt.s32.totalorder %s404_s22, %s404_s22 }
  0x38   :  { %296 = vmatpush3.msra.mxu0 %v81_v2  ;;  %307 = vmatpush3.msra.mxu1 %v76_v4 }
  0x39   :  { %297 = vmatprep.subr.mxu0 %v438_v0  ;;  %309 = vmatmul.mubr.msk.f32.vlgmr.msra.gmra.mxu1 %vm157_vm1, %v75_v5  ;;  %p411_p9 = por %p410_p8, %p409_p7 }
  0x3a   :  { %298 = vmatpush3.msra.mxu0 %v80_v6 }
  0x3b   :  { %299 = vmatprep.subr.mxu0 %v438_v0  ;;  %p412_p10 = pnand %p411_p9, %p405_p6 }
  0x3c   :  { %300 = vmatpush3.msra.mxu0 %v79_v7 }
  0x3d   :  { %302 = vmatmul.mubr.msk.f32.vlgmr.msra.gmra.mxu0 %vm83_vm2, %v78_v8 }
  0xf9   :  { %v227_v9 = vpop.f32.mrf.mxu1 }
  0xfb   :  { %v310_v10 = vpop.f32.mrf.mxu1 }
  0xfd   :  { %v153_v11 = vpop.f32.mrf.mxu0 }
  0xfe   :  { %v228_v13 = vadd.f32 %v227_v9, %v153_v11 }
  0xff   :  { %v303_v14 = vpop.f32.mrf.mxu0 }
 0x100   :  { %v238_v16 = vadd.f32 %v282_v12, %v228_v13 }
 0x102   :  { %v245_v17 = vadd.f32 %v283_v15, %v238_v16 }
 0x104   :  { %246 = vmax.xlane.f32.xlu0 %v245_v17 }
 0x18d   :  { %v247_v18 = vpop.xlane.xlu0 %246 }
 0x18e   :  { %v248_v19 = vsub.f32 %v245_v17, %v247_v18 }
 0x190   :  { %v249_v20 = vmul.f32 1.442695, %v248_v19 }
 0x192   :  { %320 = vpow2.f32 %v249_v20 }
 0x19f   :  { %v321_v21 = vpop.eup %320 }
 0x1a0   :  { %251 = vadd.xlane.f32.xlu0 %v321_v21 }
 0x229   :  { %v252_v22 = vpop.xlane.xlu0 %251 }
 0x22a   :  { %322 = vlog2.f32 %v252_v22 }
 0x237   :  { %v323_v23 = vpop.eup %322 }
 0x238   :  { %v254_v24 = vmul.f32 0.6931472, %v323_v23 }
 0x23a   :  { %v255_v26 = vadd.f32 %v254_v24, %v247_v18 }
 0x23c   :  { %v260_v27 = vmul.f32 %v284_v25, %v255_v26 }
 0x23e   :  { %v261_v28 = vsub.f32 %v238_v16, %v260_v27 }
 0x240   :  { %262 = vst [vmem:[#allocation10] sm:$0xff] %v261_v28 }
 0x241   :  { %415 = shalt.err (!%p412_p10)
}
 0x242   :  { %272 = dma.vmem_to_hbm [thread:$0]  %s270_s21, 128, %s506_s6, [#allocation4]  }
 0x243   :  { %430 = dma.done.wait [#allocation4], 128  }
 0x244   :  { %431 = vsyncadd [#allocation4], 4294967168 }
 0x245   :  { %276 = vsyncpa [#allocation3], 1 }
 0x246   :  { %277 = vsyncpa [#allocation6], 1 }
 0x247   :  { %278 = vsyncpa [#allocation9], 1 }
 0x248   :  { %279 = vsyncpa [#allocation4], 1 }

</bundles_post_ra>
